<compile_context>
chip_gen: v7x
topology: tpu7x:2x2x1
jax: 0.10.0
libtpu: 0.0.40
codegen_flags: <defaults>
</compile_context>

<pallas_src>
import functools

import jax
import jax.numpy as jnp
from jax.experimental import pallas as pl
from jax.experimental.pallas import tpu as pltpu


def _round_up(n: int, m: int) -> int:
    return ((n + m - 1) // m) * m


def valuenet_kernel(x_ref, w1_ref, b1_ref, w2_ref, b2_ref, o_ref):
    # fc1: [TILE_B, obs_p] @ [obs_p, hid_p] on the MXU, f32 accumulation.
    h = jnp.dot(x_ref[...], w1_ref[...], preferred_element_type=jnp.float32)
    h = jnp.maximum(h + b1_ref[...], 0.0)          # bias + ReLU on the VPU (f32)
    # fc2 as elementwise mul + lane reduction (VPU + XLU) — w2 is a [1, hid_p] row.
    v = jnp.sum(h * w2_ref[...], axis=-1, keepdims=True)   # [TILE_B, 1]
    # b2 is a scalar in SMEM.
    o_ref[...] = (v + b2_ref[0, 0]).astype(o_ref.dtype)
    # NOTE: for very large B the [TILE_B, 1] output is lane-sparse (masked
    # stores); a lane-dense [1, TILE_B] layout + wrapper reshape would help,
    # but is not worth the in-kernel transpose at these sizes.


@functools.partial(jax.jit, static_argnames=("tile_b",))
def value_net_forward(x, w1, b1, w2, b2, *, tile_b: int = 256):
    """x: [B, obs_dim]; w1: [obs_dim, hidden]; b1: [hidden]; w2: [hidden, 1]; b2: [1]."""
    B, obs_dim = x.shape
    hidden = w1.shape[1]

    # Pad feature axes to full 128-lane vregs; pad batch to the tile size.
    obs_p = _round_up(obs_dim, 128)
    hid_p = _round_up(hidden, 128)
    tile = max(8, min(tile_b, _round_up(B, 8)))       # tile_b capped for small B,
    Bp = _round_up(B, tile)                           # sized well under v7x VMEM.

    f32 = jnp.float32
    xp = jnp.zeros((Bp, obs_p), f32).at[:B, :obs_dim].set(x.astype(f32))
    w1p = jnp.zeros((obs_p, hid_p), f32).at[:obs_dim, :hidden].set(w1.astype(f32))
    b1p = jnp.zeros((1, hid_p), f32).at[0, :hidden].set(b1.reshape(-1).astype(f32))
    w2p = jnp.zeros((1, hid_p), f32).at[0, :hidden].set(w2.reshape(-1).astype(f32))
    b2p = b2.reshape(1, 1).astype(f32)

    grid = (Bp // tile,)
    flops = 2 * Bp * obs_p * hid_p + 2 * Bp * hid_p
    bytes_accessed = 4 * (xp.size + w1p.size + b1p.size + w2p.size + b2p.size + Bp)

    out = pl.pallas_call(
        valuenet_kernel,
        out_shape=jax.ShapeDtypeStruct((Bp, 1), f32),
        grid=grid,
        in_specs=[
            pl.BlockSpec((tile, obs_p), lambda i: (i, 0)),        # x: tiled over batch
            pl.BlockSpec((obs_p, hid_p), lambda i: (0, 0)),       # w1: VMEM-resident
            pl.BlockSpec((1, hid_p), lambda i: (0, 0)),           # b1: VMEM-resident
            pl.BlockSpec((1, hid_p), lambda i: (0, 0)),           # w2 row: VMEM-resident
            pl.BlockSpec((1, 1), lambda i: (0, 0),
                         memory_space=pltpu.MemorySpace.SMEM),    # b2: scalar in SMEM
        ],
        out_specs=pl.BlockSpec((tile, 1), lambda i: (i, 0)),
        compiler_params=pltpu.CompilerParams(
            dimension_semantics=("parallel",),
            vmem_limit_bytes=32 * 1024 * 1024,
        ),
        cost_estimate=pl.CostEstimate(
            flops=flops, transcendentals=0, bytes_accessed=bytes_accessed),
    )(xp, w1p, b1p, w2p, b2p)

    return out[:B]


def init_params(key, obs_dim, hidden_dim):
    # Mimics PyTorch nn.Linear default init: U[-1/sqrt(fan_in), +1/sqrt(fan_in)].
    k1, k2, k3, k4 = jax.random.split(key, 4)
    bound1 = 1.0 / jnp.sqrt(obs_dim)
    bound2 = 1.0 / jnp.sqrt(hidden_dim)
    w1 = jax.random.uniform(k1, (obs_dim, hidden_dim), jnp.float32, -bound1, bound1)
    b1 = jax.random.uniform(k2, (hidden_dim,), jnp.float32, -bound1, bound1)
    w2 = jax.random.uniform(k3, (hidden_dim, 1), jnp.float32, -bound2, bound2)
    b2 = jax.random.uniform(k4, (1,), jnp.float32, -bound2, bound2)
    return w1, b1, w2, b2


def _reference(x, w1, b1, w2, b2):
    return jnp.maximum(x @ w1 + b1.reshape(1, -1), 0.0) @ w2 + b2.reshape(1, 1)


if __name__ == "__main__":
    obs_dim, hidden_dim = 16, 32

    key = jax.random.PRNGKey(0)
    kx, kp, kx2 = jax.random.split(key, 3)
    w1, b1, w2, b2 = init_params(kp, obs_dim, hidden_dim)

    # Small case (matches the module's toy sizes).
    x = jax.random.normal(kx, (8, obs_dim), dtype=jnp.float32)
    out = value_net_forward(x, w1, b1, w2, b2)
    jax.block_until_ready(out)
    ref = _reference(x, w1, b1, w2, b2)
    assert out.shape == (8, 1)
    assert jnp.allclose(out, ref, atol=1e-5, rtol=1e-5)

    # Non-multiple batch to exercise the grid + batch padding/slicing path.
    x2 = jax.random.normal(kx2, (300, obs_dim), dtype=jnp.float32)
    out2 = value_net_forward(x2, w1, b1, w2, b2, tile_b=128)
    jax.block_until_ready(out2)
    ref2 = _reference(x2, w1, b1, w2, b2)
    assert out2.shape == (300, 1)
    assert jnp.allclose(out2, ref2, atol=1e-5, rtol=1e-5)

    print("KERNEL_OK")
</pallas_src>

<mosaic_0001>
module attributes {stable_mosaic.version = 11 : i64} {
  func.func @valuenet_kernel(%arg0: i32, %arg1: memref<8x128xf32, #tpu.memory_space<vmem>>, %arg2: memref<128x128xf32, #tpu.memory_space<vmem>>, %arg3: memref<1x128xf32, #tpu.memory_space<vmem>>, %arg4: memref<1x128xf32, #tpu.memory_space<vmem>>, %arg5: memref<1x1xf32, #tpu.memory_space<smem>>, %arg6: memref<8x1xf32, #tpu.memory_space<vmem>>) attributes {dimension_semantics = [#tpu.dimension_semantics<parallel>], iteration_bounds = array<i64: 1>, scalar_prefetch = 0 : i64, scratch_operands = 0 : i64, tpu.core_type = #tpu.core_type<tc>, window_params = [{transform_indices = @transform_0, window_bounds = array<i64: 8, 128>}, {pipeline_mode = #tpu.pipeline_mode<synchronous>, transform_indices = @transform_1, window_bounds = array<i64: 128, 128>}, {pipeline_mode = #tpu.pipeline_mode<synchronous>, transform_indices = @transform_2, window_bounds = array<i64: 1, 128>}, {pipeline_mode = #tpu.pipeline_mode<synchronous>, transform_indices = @transform_3, window_bounds = array<i64: 1, 128>}, {transform_indices = @transform_4, window_bounds = array<i64: 1, 1>}, {transform_indices = @transform_5, window_bounds = array<i64: 8, 1>}]} {
    %c0 = arith.constant 0 : index
    %c0_0 = arith.constant 0 : index
    %0 = vector.load %arg1[%c0, %c0_0] : memref<8x128xf32, #tpu.memory_space<vmem>>, vector<8x128xf32>
    %c0_1 = arith.constant 0 : index
    %c0_2 = arith.constant 0 : index
    %1 = vector.load %arg2[%c0_1, %c0_2] : memref<128x128xf32, #tpu.memory_space<vmem>>, vector<128x128xf32>
    %cst = arith.constant dense<0.000000e+00> : vector<8x128xf32>
    %2 = tpu.matmul %0, %1, %cst {dimension_numbers = #tpu.dot_dimension_numbers<[1], [0], [0], [1], [0, 0, 1, 1], [], []>} : vector<8x128xf32>, vector<128x128xf32>, vector<8x128xf32> -> vector<8x128xf32>
    %c0_3 = arith.constant 0 : index
    %c0_4 = arith.constant 0 : index
    %3 = vector.load %arg3[%c0_3, %c0_4] : memref<1x128xf32, #tpu.memory_space<vmem>>, vector<1x128xf32>
    %4 = vector.broadcast %3 : vector<1x128xf32> to vector<8x128xf32>
    %5 = arith.addf %2, %4 : vector<8x128xf32>
    %cst_5 = arith.constant 0.000000e+00 : f32
    %6 = vector.broadcast %cst_5 : f32 to vector<8x128xf32>
    %7 = arith.maximumf %5, %6 : vector<8x128xf32>
    %c0_6 = arith.constant 0 : index
    %c0_7 = arith.constant 0 : index
    %8 = vector.load %arg4[%c0_6, %c0_7] : memref<1x128xf32, #tpu.memory_space<vmem>>, vector<1x128xf32>
    %9 = vector.broadcast %8 : vector<1x128xf32> to vector<8x128xf32>
    %10 = arith.mulf %7, %9 : vector<8x128xf32>
    %cst_8 = arith.constant dense<0.000000e+00> : vector<8xf32>
    %11 = vector.multi_reduction <add>, %10, %cst_8 [1] : vector<8x128xf32> to vector<8xf32>
    %12 = vector.shape_cast %11 : vector<8xf32> to vector<8x1xf32>
    %c0_9 = arith.constant 0 : index
    %c0_10 = arith.constant 0 : index
    %13 = memref.load %arg5[%c0_9, %c0_10] : memref<1x1xf32, #tpu.memory_space<smem>>
    %14 = vector.broadcast %13 : f32 to vector<8x1xf32>
    %15 = arith.addf %12, %14 : vector<8x1xf32>
    %c0_11 = arith.constant 0 : index
    %c0_12 = arith.constant 0 : index
    %16 = vector.load %arg6[%c0_11, %c0_12] : memref<8x1xf32, #tpu.memory_space<vmem>>, vector<8x1xf32>
    tpu.vector_store %arg6[%c0_11, %c0_12], %15 {strides = array<i32>} : memref<8x1xf32, #tpu.memory_space<vmem>>, vector<8x1xf32>,
    return
  }
  func.func @transform_0(%arg0: i32) -> (i32, i32) {
    %c0_i32 = arith.constant 0 : i32
    %c0_i32_0 = arith.constant 0 : i32
    return %arg0, %c0_i32 : i32, i32
  }
  func.func @transform_1(%arg0: i32) -> (i32, i32) {
    %c0_i32 = arith.constant 0 : i32
    %c0_i32_0 = arith.constant 0 : i32
    %c0_i32_1 = arith.constant 0 : i32
    return %c0_i32, %c0_i32_0 : i32, i32
  }
  func.func @transform_2(%arg0: i32) -> (i32, i32) {
    %c0_i32 = arith.constant 0 : i32
    %c0_i32_0 = arith.constant 0 : i32
    %c0_i32_1 = arith.constant 0 : i32
    return %c0_i32, %c0_i32_0 : i32, i32
  }
  func.func @transform_3(%arg0: i32) -> (i32, i32) {
    %c0_i32 = arith.constant 0 : i32
    %c0_i32_0 = arith.constant 0 : i32
    %c0_i32_1 = arith.constant 0 : i32
    return %c0_i32, %c0_i32_0 : i32, i32
  }
  func.func @transform_4(%arg0: i32) -> (i32, i32) {
    %c0_i32 = arith.constant 0 : i32
    %c0_i32_0 = arith.constant 0 : i32
    %c0_i32_1 = arith.constant 0 : i32
    return %c0_i32, %c0_i32_0 : i32, i32
  }
  func.func @transform_5(%arg0: i32) -> (i32, i32) {
    %c0_i32 = arith.constant 0 : i32
    %c0_i32_0 = arith.constant 0 : i32
    return %arg0, %c0_i32 : i32, i32
  }
}

</mosaic_0001>

<bundles_post_ra>
// kernel: value_net_forward.1
= control target key start
LH: loop header
LB: loop body
LE: loop exit
PB: predicated region body
PF: predicated region fallthrough
CT: control target
= control target key end

     0   :  { %v216_v0 = vmov 0.0|0.0   ;;  %vm217_vm0 = vmmov 0   ;;  %v218_v4 = vmov 0.0   ;;  %vm129_vm1 = vcmask 7168   ;;  %s312_s1 = inlined_call_operand.vmem [shape: f32[128,128], index: 1, kind: input, shape index: {}]   ;;  %s313_s0 = inlined_call_operand.vmem [shape: f32[8,128], index: 0, kind: input, shape index: {}]   ;;  %s314_s2 = inlined_call_operand.vmem [shape: f32[1,128], index: 2, kind: input, shape index: {}]   ;;  %s315_s3 = inlined_call_operand.vmem [shape: f32[1,128], index: 3, kind: input, shape index: {}]   ;;  %s316_s4 = inlined_call_operand.<no memory space> [shape: f32[1,1], index: 4, kind: input, shape index: {}]   ;;  %s317_s5 = inlined_call_operand.vmem [shape: f32[8,1], index: 5, kind: output, shape index: {}]  }
   0x1   :  { %189 = vmatprep.subr.bf16.mxu0 %v216_v0  ;;  %v22_v1 = vld [vmem:[%s312_s1] sm:$0xff]  ;;  %v23_v2 = vld [vmem:[%s312_s1 + $0x8] sm:$0xff]  ;;  %v24_v3 = vld [vmem:[%s312_s1 + $0x10] sm:$0xff]  ;;  %186 = vmatprep.mubr.msk.f32.mxu0 %vm217_vm0, %v218_v4  ;;  %v127_v34 = vstv %s316_s4 }
   0x2   :  { %v190_v5 = vpack.c.bf16 %v23_v2, %v22_v1  ;;  %v25_v6 = vld [vmem:[%s312_s1 + $0x18] sm:$0xff]  ;;  %v26_v8 = vld [vmem:[%s312_s1 + $0x20] sm:$0xff]  ;;  %v27_v9 = vld [vmem:[%s312_s1 + $0x28] sm:$0xff] }
   0x3   :  { %v193_v7 = vpack.c.bf16 %v25_v6, %v24_v3  ;;  %v196_v10 = vpack.c.bf16 %v27_v9, %v26_v8  ;;  %v28_v11 = vld [vmem:[%s312_s1 + $0x30] sm:$0xff]  ;;  %v29_v12 = vld [vmem:[%s312_s1 + $0x38] sm:$0xff]  ;;  %v30_v14 = vld [vmem:[%s312_s1 + $0x40] sm:$0xff] }
   0x4   :  { %191 = vmatpush3.bf16.msra.mxu0 %v190_v5  ;;  %v199_v13 = vpack.c.bf16 %v29_v12, %v28_v11  ;;  %v31_v15 = vld [vmem:[%s312_s1 + $0x48] sm:$0xff]  ;;  %v32_v17 = vld [vmem:[%s312_s1 + $0x50] sm:$0xff]  ;;  %v33_v18 = vld [vmem:[%s312_s1 + $0x58] sm:$0xff] }
   0x5   :  { %192 = vmatprep.subr.bf16.mxu0 %v216_v0  ;;  %v202_v16 = vpack.c.bf16 %v31_v15, %v30_v14  ;;  %v205_v19 = vpack.c.bf16 %v33_v18, %v32_v17  ;;  %v34_v20 = vld [vmem:[%s312_s1 + $0x60] sm:$0xff]  ;;  %v35_v21 = vld [vmem:[%s312_s1 + $0x68] sm:$0xff]  ;;  %v36_v23 = vld [vmem:[%s312_s1 + $0x70] sm:$0xff] }
   0x6   :  { %v208_v22 = vpack.c.bf16 %v35_v21, %v34_v20  ;;  %v37_v24 = vld [vmem:[%s312_s1 + $0x78] sm:$0xff]  ;;  %v21_v26 = vld [vmem:[%s313_s0] sm:$0xff] }
   0x7   :  { %v211_v25 = vpack.c.bf16 %v37_v24, %v36_v23  ;;  %v135_v27 = vld [vmem:[%s314_s2] ss:$0 sm:$0xff] }
   0x8   :  { %194 = vmatpush3.bf16.msra.mxu0 %v193_v7  ;;  %v136_v31 = vld [vmem:[%s315_s3] ss:$0 sm:$0xff] }
   0x9   :  { %195 = vmatprep.subr.bf16.mxu0 %v216_v0 }
   0xc   :  { %197 = vmatpush3.bf16.msra.mxu0 %v196_v10 }
   0xd   :  { %198 = vmatprep.subr.bf16.mxu0 %v216_v0 }
  0x10   :  { %200 = vmatpush3.bf16.msra.mxu0 %v199_v13 }
  0x11   :  { %201 = vmatprep.subr.bf16.mxu0 %v216_v0 }
  0x14   :  { %203 = vmatpush3.bf16.msra.mxu0 %v202_v16 }
  0x15   :  { %204 = vmatprep.subr.bf16.mxu0 %v216_v0 }
  0x18   :  { %206 = vmatpush3.bf16.msra.mxu0 %v205_v19 }
  0x19   :  { %207 = vmatprep.subr.bf16.mxu0 %v216_v0 }
  0x1c   :  { %209 = vmatpush3.bf16.msra.mxu0 %v208_v22 }
  0x1d   :  { %210 = vmatprep.subr.bf16.mxu0 %v216_v0 }
  0x20   :  { %212 = vmatpush3.bf16.msra.mxu0 %v211_v25 }
  0x23   :  { %187 = vmatmul.mubr.f32.vlgmr.msra.gmra.mrb[0].mxu0 %v21_v26 }
  0xf6   :  { %v111_v28 = vpop.f32.mrb[0].mxu0 }
  0xf7   :  { %v112_v29 = vadd.f32 %v135_v27, %v111_v28  ;;  %v188_v30 = vpop.f32.mrb[1].mxu0 }
  0xf9   :  { %v115_v32 = vmax.f32 %v112_v29, 0.0 }
  0xfb   :  { %v123_v33 = vmul.f32 %v136_v31, %v115_v32 }
  0xfd   :  { %124 = vadd.xlane.f32.xlu0 %v123_v33 }
 0x18a   :  { %v125_v35 = vpop.xlane.xlu0 %124 }
 0x18b   :  { %v128_v36 = vadd.f32 %v127_v34, %v125_v35 }
 0x18d   :  { %130 = vst.msk [vmem:[%s317_s5] sm:$0xff] %vm129_vm1, %v128_v36 }

</bundles_post_ra>
